<compile_context>
chip_gen: v5e
topology: v5e:2x2
jax: 0.10.0
libtpu: 0.0.40
codegen_flags: <defaults>
</compile_context>

<pallas_src>
import jax
import jax.numpy as jnp
from jax.experimental import pallas as pl
from jax.experimental.pallas import tpu as pltpu


def _round_up(x, m):
    return (x + m - 1) // m * m


def _pick_tile(padded_dim, candidates=(1024, 512, 256, 128)):
    # Largest lane-dense tile that evenly divides the (128-multiple) padded dim.
    for c in candidates:
        if padded_dim % c == 0:
            return c
    return padded_dim


def word2vec_kernel(x_ref, w1_ref, w2_ref, o_ref, h_ref):
    # h = x @ W_emb^T : computed once per batch tile (vocab-out axis j is the
    # inner "arbitrary" grid axis) and kept resident in VMEM scratch.
    @pl.when(pl.program_id(1) == 0)
    def _():
        h_ref[...] = jnp.dot(
            x_ref[...], w1_ref[...], preferred_element_type=jnp.float32
        ).astype(h_ref.dtype)

    # out tile = h @ W_out^T[:, j*TN:(j+1)*TN]   (bf16 operands, f32 accumulate)
    o_ref[...] = jnp.dot(
        h_ref[...], w2_ref[...], preferred_element_type=jnp.float32
    ).astype(o_ref.dtype)


def prepare_params(w_emb, w_out, dtype=jnp.bfloat16):
    """One-time (init) weight prep: transpose + pad to 128-multiples + cast.

    w_emb: (E, V), w_out: (V, E)  ->  w1: (Vp, Ep), w2: (Ep, Vp)
    """
    E, V = w_emb.shape
    Vp = _round_up(V, 128)
    Ep = _round_up(E, 128)
    w1 = jnp.pad(w_emb.T.astype(dtype), ((0, Vp - V), (0, Ep - E)))  # (Vp, Ep)
    w2 = jnp.pad(w_out.T.astype(dtype), ((0, Ep - E), (0, Vp - V)))  # (Ep, Vp)
    return w1, w2


def word2vec_forward(x, w1, w2):
    """x: (B, V) float; w1: (Vp, Ep) bf16; w2: (Ep, Vp) bf16 -> (B, V) f32."""
    B, V = x.shape
    Vp, Ep = w1.shape

    TB = min(128, _round_up(B, 8))   # batch tile (sublane aligned)
    Bp = _round_up(B, TB)
    TN = _pick_tile(Vp)              # vocab-out tile (lane dense)

    x_p = jnp.pad(x.astype(w1.dtype), ((0, Bp - B), (0, Vp - V)))

    grid = (Bp // TB, Vp // TN)

    itemsize = jnp.dtype(w1.dtype).itemsize
    cost = pl.CostEstimate(
        flops=4 * Bp * Vp * Ep,  # two (B,V,E)-shaped matmuls
        transcendentals=0,
        bytes_accessed=(Bp * Vp + Vp * Ep + Ep * Vp) * itemsize + Bp * Vp * 4,
    )

    out = pl.pallas_call(
        word2vec_kernel,
        out_shape=jax.ShapeDtypeStruct((Bp, Vp), jnp.float32),
        grid_spec=pltpu.PrefetchScalarGridSpec(
            num_scalar_prefetch=0,
            grid=grid,
            in_specs=[
                # x rows for this batch tile; same block across j -> stays resident.
                pl.BlockSpec((TB, Vp), lambda i, j: (i, 0)),
                # W_emb^T fully resident (small E dim).
                pl.BlockSpec((Vp, Ep), lambda i, j: (0, 0)),
                # W_out^T streamed in lane-dense vocab tiles (pipelined DMA).
                pl.BlockSpec((Ep, TN), lambda i, j: (0, j)),
            ],
            out_specs=pl.BlockSpec((TB, TN), lambda i, j: (i, j)),
            scratch_shapes=[pltpu.VMEM((TB, Ep), w1.dtype)],  # resident hidden h
        ),
        compiler_params=pltpu.CompilerParams(
            dimension_semantics=("parallel", "arbitrary"),
            vmem_limit_bytes=32 * 1024 * 1024,
        ),
        cost_estimate=cost,
    )(x_p, w1, w2)

    return out[:B, :V]


if __name__ == "__main__":
    vocab_size = 64
    embedding_size = 30
    batch = 8

    key = jax.random.PRNGKey(0)
    k_x, k_emb, k_out = jax.random.split(key, 3)

    # Same shapes as the nn.Linear weights of the PyTorch module.
    w_emb = jax.random.normal(k_emb, (embedding_size, vocab_size), jnp.float32) * 0.1
    w_out = jax.random.normal(k_out, (vocab_size, embedding_size), jnp.float32) * 0.1

    # The module is a generic dense Linear pair, so test with a dense input
    # (one-hot inputs are a special case and work identically).
    x = jax.random.normal(k_x, (batch, vocab_size), jnp.float32) * 0.5

    # One-time weight preparation (init-time, outside the forward hot path).
    w1, w2 = prepare_params(w_emb, w_out)

    fwd = jax.jit(word2vec_forward)
    y = jax.block_until_ready(fwd(x, w1, w2))

    # Reference mirroring the kernel's bf16 quantization (f32 accumulation).
    xb = x.astype(jnp.bfloat16).astype(jnp.float32)
    web = w_emb.astype(jnp.bfloat16).astype(jnp.float32)
    wob = w_out.astype(jnp.bfloat16).astype(jnp.float32)
    h_q = (xb @ web.T).astype(jnp.bfloat16).astype(jnp.float32)
    y_ref_q = h_q @ wob.T

    # Full-f32 reference (exact PyTorch-equivalent forward).
    y_ref = (x @ w_emb.T) @ w_out.T

    assert y.shape == (batch, vocab_size)
    assert jnp.allclose(y, y_ref_q, atol=5e-3, rtol=1e-2), "mismatch vs bf16 reference"
    assert jnp.allclose(y, y_ref, atol=5e-2, rtol=5e-2), "mismatch vs f32 reference"

    print("KERNEL_OK")
</pallas_src>

<mosaic_0001>
module attributes {stable_mosaic.version = 11 : i64} {
  func.func @word2vec_kernel(%arg0: i32, %arg1: i32, %arg2: memref<8x128xbf16, #tpu.memory_space<vmem>>, %arg3: memref<128x128xbf16, #tpu.memory_space<vmem>>, %arg4: memref<128x128xbf16, #tpu.memory_space<vmem>>, %arg5: memref<8x128xf32, #tpu.memory_space<vmem>>, %arg6: memref<8x128xbf16, #tpu.memory_space<vmem>>) attributes {dimension_semantics = [#tpu.dimension_semantics<parallel>, #tpu.dimension_semantics<arbitrary>], iteration_bounds = array<i64: 1, 1>, scalar_prefetch = 0 : i64, scratch_operands = 1 : i64, tpu.core_type = #tpu.core_type<tc>, window_params = [{transform_indices = @transform_0, window_bounds = array<i64: 8, 128>}, {pipeline_mode = #tpu.pipeline_mode<synchronous>, transform_indices = @transform_1, window_bounds = array<i64: 128, 128>}, {transform_indices = @transform_2, window_bounds = array<i64: 128, 128>}, {transform_indices = @transform_3, window_bounds = array<i64: 8, 128>}]} {
    %c0_i32 = arith.constant 0 : i32
    %0 = arith.cmpi eq, %arg1, %c0_i32 : i32
    %1 = arith.extui %0 : i1 to i32
    %c0_i32_0 = arith.constant 0 : i32
    %2 = arith.cmpi ne, %1, %c0_i32_0 : i32
    scf.if %2 {
      %c0_6 = arith.constant 0 : index
      %c0_7 = arith.constant 0 : index
      %7 = vector.load %arg2[%c0_6, %c0_7] : memref<8x128xbf16, #tpu.memory_space<vmem>>, vector<8x128xbf16>
      %c0_8 = arith.constant 0 : index
      %c0_9 = arith.constant 0 : index
      %8 = vector.load %arg3[%c0_8, %c0_9] : memref<128x128xbf16, #tpu.memory_space<vmem>>, vector<128x128xbf16>
      %cst_10 = arith.constant dense<0.000000e+00> : vector<8x128xf32>
      %9 = tpu.matmul %7, %8, %cst_10 {dimension_numbers = #tpu.dot_dimension_numbers<[1], [0], [0], [1], [0, 0, 1, 1], [], []>} : vector<8x128xbf16>, vector<128x128xbf16>, vector<8x128xf32> -> vector<8x128xf32>
      %10 = arith.truncf %9 : vector<8x128xf32> to vector<8x128xbf16>
      %c0_11 = arith.constant 0 : index
      %c0_12 = arith.constant 0 : index
      %11 = vector.load %arg6[%c0_11, %c0_12] : memref<8x128xbf16, #tpu.memory_space<vmem>>, vector<8x128xbf16>
      tpu.vector_store %arg6[%c0_11, %c0_12], %10 {strides = array<i32>} : memref<8x128xbf16, #tpu.memory_space<vmem>>, vector<8x128xbf16>,
    } else {
    }
    %c0 = arith.constant 0 : index
    %c0_1 = arith.constant 0 : index
    %3 = vector.load %arg6[%c0, %c0_1] : memref<8x128xbf16, #tpu.memory_space<vmem>>, vector<8x128xbf16>
    %c0_2 = arith.constant 0 : index
    %c0_3 = arith.constant 0 : index
    %4 = vector.load %arg4[%c0_2, %c0_3] : memref<128x128xbf16, #tpu.memory_space<vmem>>, vector<128x128xbf16>
    %cst = arith.constant dense<0.000000e+00> : vector<8x128xf32>
    %5 = tpu.matmul %3, %4, %cst {dimension_numbers = #tpu.dot_dimension_numbers<[1], [0], [0], [1], [0, 0, 1, 1], [], []>} : vector<8x128xbf16>, vector<128x128xbf16>, vector<8x128xf32> -> vector<8x128xf32>
    %c0_4 = arith.constant 0 : index
    %c0_5 = arith.constant 0 : index
    %6 = vector.load %arg5[%c0_4, %c0_5] : memref<8x128xf32, #tpu.memory_space<vmem>>, vector<8x128xf32>
    tpu.vector_store %arg5[%c0_4, %c0_5], %5 {strides = array<i32>} : memref<8x128xf32, #tpu.memory_space<vmem>>, vector<8x128xf32>,
    return
  }
  func.func @transform_0(%arg0: i32, %arg1: i32) -> (i32, i32) {
    %c0_i32 = arith.constant 0 : i32
    %c0_i32_0 = arith.constant 0 : i32
    return %arg0, %c0_i32 : i32, i32
  }
  func.func @transform_1(%arg0: i32, %arg1: i32) -> (i32, i32) {
    %c0_i32 = arith.constant 0 : i32
    %c0_i32_0 = arith.constant 0 : i32
    %c0_i32_1 = arith.constant 0 : i32
    return %c0_i32, %c0_i32_0 : i32, i32
  }
  func.func @transform_2(%arg0: i32, %arg1: i32) -> (i32, i32) {
    %c0_i32 = arith.constant 0 : i32
    %c0_i32_0 = arith.constant 0 : i32
    return %c0_i32, %arg1 : i32, i32
  }
  func.func @transform_3(%arg0: i32, %arg1: i32) -> (i32, i32) {
    %c0_i32 = arith.constant 0 : i32
    return %arg0, %arg1 : i32, i32
  }
}

</mosaic_0001>

<bundles_post_ra>
// kernel: word2vec_forward.1
= control target key start
LH: loop header
LB: loop body
LE: loop exit
PB: predicated region body
PF: predicated region fallthrough
CT: control target
= control target key end

     0   :  { %8 = vsyncpa [#allocation4], 0  ;;  %s428_s0 = inlined_call_operand.vmem [shape: bf16[8,128], index: 0, kind: input, shape index: {}]   ;;  %s429_s1 = inlined_call_operand.hbm [shape: bf16[128,128], index: 1, kind: input, shape index: {}]   ;;  %s430_s2 = inlined_call_operand.hbm [shape: bf16[128,128], index: 2, kind: input, shape index: {}]   ;;  %s431_s3 = inlined_call_operand.hbm [shape: f32[8,128], index: 3, kind: output, shape index: {}]  }
   0x1   :  { %9 = vsyncpa [#allocation7], 0 }
   0x2   :  { %10 = vsyncpa [#allocation5], 0  ;;  %s17_s14 = sshll.u32 %s429_s1, 4  ;;  %s391_s15 = smov [#allocation3]   ;;  %s18_s14 = int_to_ptr.hbm [resolvable:$true] %s17_s14 }
   0x3   :  { %s19_s16 = sshll.u32 %s391_s15, 4  ;;  %s30_s19 = sshll.u32 %s430_s2, 4  ;;  %s20_s16 = int_to_ptr.vmem [resolvable:$true] %s19_s16  ;;  %s31_s19 = int_to_ptr.hbm [resolvable:$true] %s30_s19 }
   0x4   :  { %s392_s20 = smov 64   ;;  %s393_s21 = smov 4  }
   0x5   :  { %25 = dma.hbm_to_vmem [thread:$0]  %s18_s14, 1024, %s20_s16, [#allocation4], %s392_s20, %s392_s20, %s393_s21  }
   0x6   :  { %s394_s22 = smov [#allocation6]  }
   0x7   :  { %s32_s23 = sshll.u32 %s394_s22, 4  ;;  %s33_s23 = int_to_ptr.vmem [resolvable:$true] %s32_s23 }
   0x8   :  { %38 = dma.hbm_to_vmem [thread:$0]  %s31_s19, 1024, %s33_s23, [#allocation7], %s392_s20, %s392_s20, %s393_s21  }
   0x9   :  { %385 = dma.done.wait [#allocation4], 1024  }
   0xa   :  { %386 = vsyncadd [#allocation4], 4294966272 }
   0xb   :  { %387 = dma.done.wait [#allocation7], 1024  }
   0xc   :  { %388 = vsyncadd [#allocation7], 4294966272  ;;  %v299_v0 = vld [vmem:[#allocation3 + $0x38] sm:$0xff]  ;;  %v298_v1 = vld [vmem:[#allocation3 + $0x30] sm:$0xff]  ;;  %s395_s24 = smov [#allocation8]   ;;  %s217_s28 = sshll.u32 %s431_s3, 4  ;;  %s218_s28 = int_to_ptr.hbm [resolvable:$true] %s217_s28 }
   0xd   :  { %116 = vmatpush.bf16.msra.mxu0 %v299_v0  ;;  %v307_v2 = vld [vmem:[#allocation6 + $0x38] sm:$0xff]  ;;  %v306_v3 = vld [vmem:[#allocation6 + $0x30] sm:$0xff]  ;;  %v297_v4 = vld [vmem:[#allocation3 + $0x28] sm:$0xff]  ;;  %s215_s25 = sshll.u32 %s395_s24, 4  ;;  %s216_s25 = int_to_ptr.vmem [resolvable:$true] %s215_s25 }
   0xe   :  { %196 = vmatpush.bf16.msra.mxu1 %v307_v2  ;;  %v305_v5 = vld [vmem:[#allocation6 + $0x28] sm:$0xff]  ;;  %v296_v6 = vld [vmem:[#allocation3 + $0x20] sm:$0xff]  ;;  %v295_v8 = vld [vmem:[#allocation3 + $0x18] sm:$0xff] }
   0xf   :  { %v304_v7 = vld [vmem:[#allocation6 + $0x20] sm:$0xff]  ;;  %v303_v9 = vld [vmem:[#allocation6 + $0x18] sm:$0xff]  ;;  %v294_v10 = vld [vmem:[#allocation3 + $0x10] sm:$0xff] }
  0x10   :  { %v293_v11 = vld [vmem:[#allocation3 + $0x8] sm:$0xff]  ;;  %v292_v12 = vld [vmem:[#allocation3] sm:$0xff]  ;;  %v51_v13 = vld [vmem:[%s428_s0] sm:$0xf] }
  0x11   :  { %117 = vmatpush.bf16.msra.mxu0 %v298_v1  ;;  %v302_v14 = vld [vmem:[#allocation6 + $0x10] sm:$0xff]  ;;  %v301_v15 = vld [vmem:[#allocation6 + $0x8] sm:$0xff]  ;;  %v300_v16 = vld [vmem:[#allocation6] sm:$0xff] }
  0x12   :  { %197 = vmatpush.bf16.msra.mxu1 %v306_v3 }
  0x15   :  { %118 = vmatpush.bf16.msra.mxu0 %v297_v4 }
  0x16   :  { %198 = vmatpush.bf16.msra.mxu1 %v305_v5 }
  0x19   :  { %119 = vmatpush.bf16.msra.mxu0 %v296_v6 }
  0x1a   :  { %199 = vmatpush.bf16.msra.mxu1 %v304_v7 }
  0x1d   :  { %120 = vmatpush.bf16.msra.mxu0 %v295_v8 }
  0x1e   :  { %200 = vmatpush.bf16.msra.mxu1 %v303_v9 }
  0x21   :  { %121 = vmatpush.bf16.msra.mxu0 %v294_v10 }
  0x22   :  { %201 = vmatpush.bf16.msra.mxu1 %v302_v14 }
  0x25   :  { %122 = vmatpush.bf16.msra.mxu0 %v293_v11 }
  0x26   :  { %202 = vmatpush.bf16.msra.mxu1 %v301_v15 }
  0x29   :  { %123 = vmatpush.bf16.msra.mxu0 %v292_v12 }
  0x2a   :  { %203 = vmatpush.bf16.msra.mxu1 %v300_v16 }
  0x2c   :  { %124 = vmatmul.bf16.vlgmr.msra.gmra.mxu0 %v51_v13 }
  0xa9   :  { %v125_v17 = vpop.f32.mrf.mxu0 }
  0xaa   :  { %v129_v18 = vpack.c.bf16 %v125_v17, %v125_v17 }
  0xac   :  { %130 = vst [vmem:[#allocation2] sm:$0xf] %v129_v18 }
  0xb1   :  { %v127_v19 = vpop.f32.mrf.mxu0 }
  0xb3   :  { %v131_v20 = vld [vmem:[#allocation2] sm:$0xf] }
  0xb4   :  { %204 = vmatmul.bf16.vlgmr.msra.gmra.mxu1 %v131_v20 }
 0x131   :  { %v205_v21 = vpop.f32.mrf.mxu1 }
 0x132   :  { %209 = vst [vmem:[#allocation8] sm:$0xff] %v205_v21 }
 0x133   :  { %220 = dma.vmem_to_hbm [thread:$0]  %s216_s25, 128, %s218_s28, [#allocation5]  }
 0x139   :  { %v207_v22 = vpop.f32.mrf.mxu1 }
 0x13a   :  { %389 = dma.done.wait [#allocation5], 128  }
 0x13b   :  { %390 = vsyncadd [#allocation5], 4294967168 }
 0x13c   :  { %225 = vsyncpa [#allocation4], 1 }
 0x13d   :  { %226 = vsyncpa [#allocation7], 1 }
 0x13e   :  { %227 = vsyncpa [#allocation5], 1 }

</bundles_post_ra>
